<compile_context>
chip_gen: v5e
topology: v5e:2x2
jax: 0.10.0
libtpu: 0.0.40
codegen_flags: <defaults>
</compile_context>

<pallas_src>
import functools

import jax
import jax.numpy as jnp
from jax.experimental import pallas as pl
from jax.experimental.pallas import tpu as pltpu

EPS = 1e-5


def _round_up(a, b):
    return ((a + b - 1) // b) * b


# ---------------------------------------------------------------------------
# Pass S: per-channel partial sums (s1, s2) of a slab, tiled over columns.
# Single sweep: each column chunk is loaded once and feeds both running sums.
# ---------------------------------------------------------------------------
def _stats_kernel(x_ref, s_ref, *, chunk):
    j = pl.program_id(1)

    @pl.when(j == 0)
    def _init():
        s_ref[...] = jnp.zeros_like(s_ref)

    c_pad, tile = x_ref.shape
    s1 = jnp.zeros((c_pad, 1), jnp.float32)
    s2 = jnp.zeros((c_pad, 1), jnp.float32)
    for c0 in range(0, tile, chunk):
        v = x_ref[:, c0:c0 + chunk].astype(jnp.float32)
        s1 = s1 + jnp.sum(v, axis=1, keepdims=True)
        s2 = s2 + jnp.sum(v * v, axis=1, keepdims=True)
    s_ref[...] += jnp.concatenate([s1, s2], axis=1)


# ---------------------------------------------------------------------------
# Passes 1/2: BN (folded scale/shift) + ReLU + dilated conv on one column tile,
# optional BN-partial-stats output, optional residual add.
# ---------------------------------------------------------------------------
def _bn_relu_conv_kernel(*refs, width, dilation, left_pad, halo, tile, length,
                         compute_dtype, with_stats, with_residual):
    left_ref, mid_ref, right_ref = refs[0], refs[1], refs[2]
    i = 3
    if with_residual:
        res_ref = refs[i]
        i += 1
    scale_ref, shift_ref, w_ref, b_ref = refs[i], refs[i + 1], refs[i + 2], refs[i + 3]
    out_ref = refs[i + 4]
    stats_ref = refs[i + 5] if with_stats else None

    j = pl.program_id(1)
    seg_start = j * tile                      # tile offset within its batch segment

    # Assemble the lane-aligned haloed window and apply folded BN + ReLU.
    win = jnp.concatenate([left_ref[...], mid_ref[...], right_ref[...]], axis=1)
    act = jnp.maximum(win.astype(jnp.float32) * scale_ref[...] + shift_ref[...], 0.0)

    # Reproduce per-sample 'same' zero padding: zero every column outside [0, L)
    # of this sample (guards, neighbouring samples, per-sample tail pad).
    wcol = jax.lax.broadcasted_iota(jnp.int32, (1, act.shape[1]), 1)
    lo = halo - seg_start
    act = jnp.where((wcol >= lo) & (wcol < lo + length), act, 0.0)
    act = act.astype(compute_dtype)

    # im2col: stack the `width` dilated taps along the contraction dim and run
    # ONE MXU matmul with K = width * C_pad (f32 accumulation).
    base = halo - left_pad
    taps = [act[:, base + k * dilation: base + k * dilation + tile]
            for k in range(width)]
    rhs = taps[0] if width == 1 else jnp.concatenate(taps, axis=0)
    acc = jnp.dot(w_ref[...], rhs, preferred_element_type=jnp.float32)
    acc = acc + b_ref[...]
    if with_residual:
        acc = acc + res_ref[...].astype(jnp.float32)

    # Keep per-sample pad columns of the output slab exactly zero (required for
    # the downstream BN statistics and safe slab reuse).
    ccol = jax.lax.broadcasted_iota(jnp.int32, (1, tile), 1)
    acc = jnp.where(ccol < (length - seg_start), acc, 0.0)
    out_ref[...] = acc.astype(out_ref.dtype)

    if with_stats:
        @pl.when(j == 0)
        def _init():
            stats_ref[...] = jnp.zeros_like(stats_ref)

        s1 = jnp.sum(acc, axis=1, keepdims=True)
        s2 = jnp.sum(acc * acc, axis=1, keepdims=True)
        stats_ref[...] += jnp.concatenate([s1, s2], axis=1)


# ---------------------------------------------------------------------------
# Host-side helpers.
# ---------------------------------------------------------------------------
def _finalize_bn(partial_stats, gamma, beta, count):
    """partial_stats: (N, C_pad, 2) per-batch partial sums -> folded scale/shift."""
    s = jnp.sum(partial_stats, axis=0)
    mean = s[:, 0] / count
    # TODO(synk): switch to a shifted/Welford form if E[x^2]-mean^2 cancellation
    # ever becomes visible at very large N*L.
    var = jnp.maximum(s[:, 1] / count - mean * mean, 0.0)
    scale = gamma * jax.lax.rsqrt(var + EPS)
    shift = beta - mean * scale
    return scale.reshape(-1, 1), shift.reshape(-1, 1)


def _vmem_limit(need_bytes):
    try:
        cap = int(pltpu.get_tpu_info().vmem_capacity_bytes) * 7 // 8   # ~56 MiB on v7x
    except Exception:
        cap = 48 * 1024 * 1024
    return int(min(max(need_bytes, 4 * 1024 * 1024), cap))


@functools.partial(jax.jit,
                   static_argnames=("width", "dilation", "compute_dtype", "tile_target"))
def residual_block_v2(x, params, *, width, dilation,
                      compute_dtype=jnp.bfloat16, tile_target=512):
    """x: (N, C, L) float32.  params: (g1, b1, w1, cb1, g2, b2, w2, cb2) with
    PyTorch shapes: gamma/beta/conv-bias (C,), conv weight (C, C, width)."""
    N, C, L = x.shape
    g1, b1, w1, cb1, g2, b2, w2, cb2 = params

    total_pad = dilation * (width - 1)
    left_pad = total_pad // 2                 # PyTorch 'same': extra on the right
    rpad = total_pad - left_pad

    HB = _round_up(max(left_pad, rpad, 1), 128)          # halo block width (lane aligned)
    eff = min(tile_target, _round_up(L + total_pad, 128))
    T = max(HB, _round_up(eff, HB))                      # column tile (mult of 128 & HB)
    Lp = _round_up(L + total_pad, T)                     # per-sample segment width
    J = Lp // T                                          # tiles per sample
    GL = T                                               # left guard keeps halo blocks in range
    G = GL + N * Lp + HB                                 # slab width
    C_pad = _round_up(C, 16)                             # sublane/bf16-pack friendly
    # TODO(synk): for MXU-bound (large C) cases consider padding C to 128/256.
    count = N * L

    # ---- parameter prep: pad channels, stack conv taps along the K dim ----
    def pad_vec(v):
        return jnp.pad(v.astype(jnp.float32), (0, C_pad - C))

    def prep_w(w):                                       # (C, C, W) -> (C_pad, W*C_pad)
        wp = jnp.zeros((C_pad, C_pad, width), jnp.float32).at[:C, :C, :].set(
            w.astype(jnp.float32))
        return jnp.transpose(wp, (0, 2, 1)).reshape(C_pad, width * C_pad).astype(compute_dtype)

    g1p, b1p, g2p, b2p = pad_vec(g1), pad_vec(b1), pad_vec(g2), pad_vec(b2)
    cb1p = pad_vec(cb1).reshape(C_pad, 1)
    cb2p = pad_vec(cb2).reshape(C_pad, 1)
    w1s, w2s = prep_w(w1), prep_w(w2)

    # ---- lane-dense working slab (pad columns are exact zeros) ----
    # TODO(synk): keep the slab layout persistent across stacked residual blocks
    # (or fold the NCL->slab transpose into the kernel DMA) to amortize this repack.
    xp = jnp.pad(x.astype(compute_dtype), ((0, 0), (0, C_pad - C), (0, Lp - L)))
    x_slab = jnp.pad(xp.transpose(1, 0, 2).reshape(C_pad, N * Lp), ((0, 0), (GL, HB)))

    # ---- index maps (all Blocked, all lane aligned) ----
    TH, LH = T // HB, Lp // HB

    def center_map(n, j):
        return (0, 1 + n * J + j)

    def left_map(n, j):
        return (0, TH + n * LH + j * TH - 1)

    def right_map(n, j):
        return (0, TH + n * LH + (j + 1) * TH)

    def stats_map(n, j):
        return (n, 0, 0)

    def const_map(n, j):
        return (0, 0)

    grid = (N, J)
    bpe = 2 if compute_dtype == jnp.bfloat16 else 4
    win_cols = T + 2 * HB
    blocks = (2 * C_pad * HB * bpe + 2 * C_pad * T * bpe + C_pad * T * 4
              + C_pad * 2 * 4 + C_pad * width * C_pad * bpe + 3 * C_pad * 4)
    temps = 2 * C_pad * win_cols * 4 + width * C_pad * T * bpe + 2 * C_pad * T * 4
    vmem = _vmem_limit(3 * (2 * blocks + temps) + (8 << 20))

    spec_center = pl.BlockSpec((C_pad, T), center_map)
    spec_left = pl.BlockSpec((C_pad, HB), left_map)
    spec_right = pl.BlockSpec((C_pad, HB), right_map)
    spec_stats = pl.BlockSpec((None, C_pad, 2), stats_map)
    spec_cvec = pl.BlockSpec((C_pad, 1), const_map)
    spec_w = pl.BlockSpec((C_pad, width * C_pad), const_map)
    stats_shape = jax.ShapeDtypeStruct((N, C_pad, 2), jnp.float32)

    # ---- pass S: BN1 partial statistics over x ----
    stats_x = pl.pallas_call(
        functools.partial(_stats_kernel, chunk=128),
        grid=grid,
        in_specs=[spec_center],
        out_specs=spec_stats,
        out_shape=stats_shape,
        compiler_params=pltpu.CompilerParams(
            dimension_semantics=("parallel", "arbitrary"), vmem_limit_bytes=vmem),
    )(x_slab)
    scale1, shift1 = _finalize_bn(stats_x, g1p, b1p, count)

    conv_kw = dict(width=width, dilation=dilation, left_pad=left_pad, halo=HB,
                   tile=T, length=L, compute_dtype=compute_dtype)

    # ---- pass 1: h1 = conv1(relu(bn1(x)))  (+ BN2 partial statistics) ----
    h1_slab, stats_h1 = pl.pallas_call(
        functools.partial(_bn_relu_conv_kernel, with_stats=True, with_residual=False,
                          **conv_kw),
        grid=grid,
        in_specs=[spec_left, spec_center, spec_right,
                  spec_cvec, spec_cvec, spec_w, spec_cvec],
        out_specs=[spec_center, spec_stats],
        out_shape=[jax.ShapeDtypeStruct((C_pad, G), compute_dtype), stats_shape],
        compiler_params=pltpu.CompilerParams(
            dimension_semantics=("parallel", "arbitrary"), vmem_limit_bytes=vmem),
    )(x_slab, x_slab, x_slab, scale1, shift1, w1s, cb1p)
    scale2, shift2 = _finalize_bn(stats_h1, g2p, b2p, count)

    # ---- pass 2: out = conv2(relu(bn2(h1))) + x ----
    out_slab = pl.pallas_call(
        functools.partial(_bn_relu_conv_kernel, with_stats=False, with_residual=True,
                          **conv_kw),
        grid=grid,
        in_specs=[spec_left, spec_center, spec_right, spec_center,
                  spec_cvec, spec_cvec, spec_w, spec_cvec],
        out_specs=spec_center,
        out_shape=jax.ShapeDtypeStruct((C_pad, G), jnp.float32),
        compiler_params=pltpu.CompilerParams(
            dimension_semantics=("parallel", "parallel"), vmem_limit_bytes=vmem),
    )(h1_slab, h1_slab, h1_slab, x_slab, scale2, shift2, w2s, cb2p)

    core = out_slab[:C, GL:GL + N * Lp]
    return core.reshape(C, N, Lp)[:, :, :L].transpose(1, 0, 2)


# ---------------------------------------------------------------------------
# Pure-JAX reference (independent math path).
# ---------------------------------------------------------------------------
def residual_block_v2_ref(x, params, *, width, dilation):
    g1, b1, w1, cb1, g2, b2, w2, cb2 = params
    total_pad = dilation * (width - 1)
    left_pad = total_pad // 2

    def bn(h, g, b):
        mean = jnp.mean(h, axis=(0, 2), keepdims=True)
        var = jnp.mean(jnp.square(h - mean), axis=(0, 2), keepdims=True)
        return (h - mean) / jnp.sqrt(var + EPS) * g.reshape(1, -1, 1) + b.reshape(1, -1, 1)

    def conv(h, w, cb):
        out = jax.lax.conv_general_dilated(
            h, w, window_strides=(1,),
            padding=[(left_pad, total_pad - left_pad)],
            rhs_dilation=(dilation,),
            dimension_numbers=('NCH', 'OIH', 'NCH'))
        return out + cb.reshape(1, -1, 1)

    h = jax.nn.relu(bn(x, g1, b1))
    h = conv(h, w1, cb1)
    h = jax.nn.relu(bn(h, g2, b2))
    h = conv(h, w2, cb2)
    return h + x


if __name__ == "__main__":
    key = jax.random.PRNGKey(0)

    def make_params(k, C, W):
        ks = jax.random.split(k, 8)
        g1 = 1.0 + 0.1 * jax.random.normal(ks[0], (C,), jnp.float32)
        b1 = 0.1 * jax.random.normal(ks[1], (C,), jnp.float32)
        w1 = 0.3 * jax.random.normal(ks[2], (C, C, W), jnp.float32)
        cb1 = 0.1 * jax.random.normal(ks[3], (C,), jnp.float32)
        g2 = 1.0 + 0.1 * jax.random.normal(ks[4], (C,), jnp.float32)
        b2 = 0.1 * jax.random.normal(ks[5], (C,), jnp.float32)
        w2 = 0.3 * jax.random.normal(ks[6], (C, C, W), jnp.float32)
        cb2 = 0.1 * jax.random.normal(ks[7], (C,), jnp.float32)
        return (g1, b1, w1, cb1, g2, b2, w2, cb2)

    configs = [
        # (N, C, L, width, dilation, compute_dtype, atol, rtol)
        (2, 4, 16, 3, 2, jnp.float32, 5e-4, 5e-4),     # odd kernel, dilated 'same'
        (2, 4, 16, 2, 1, jnp.float32, 5e-4, 5e-4),     # even kernel: asymmetric pad
        (2, 96, 1300, 3, 2, jnp.float32, 5e-4, 5e-4),  # multi-tile columns + halo, f32 exact
        (2, 96, 1300, 5, 3, jnp.bfloat16, 1.5e-1, 1e-1),  # bf16 MXU fast path (looser tol)
    ]
    kx, kp = jax.random.split(key)
    for idx, (N, C, L, W, D, cdt, atol, rtol) in enumerate(configs):
        x = jax.random.normal(jax.random.fold_in(kx, idx), (N, C, L), jnp.float32)
        params = make_params(jax.random.fold_in(kp, idx), C, W)

        out = jax.block_until_ready(
            residual_block_v2(x, params, width=W, dilation=D, compute_dtype=cdt))
        ref = residual_block_v2_ref(x, params, width=W, dilation=D)
        assert out.shape == ref.shape, f"config {idx}: shape {out.shape} vs {ref.shape}"
        assert bool(jnp.all(jnp.isfinite(out))), f"config {idx}: non-finite output"
        max_diff = float(jnp.max(jnp.abs(out - ref)))
        assert jnp.allclose(out, ref, atol=atol, rtol=rtol), \
            f"config {idx}: max abs diff {max_diff}"

    print("KERNEL_OK")
</pallas_src>

<mosaic_0001>
module attributes {stable_mosaic.version = 11 : i64} {
  func.func @_stats_kernel(%arg0: i32, %arg1: i32, %arg2: memref<16x128xf32, #tpu.memory_space<vmem>>, %arg3: memref<1x16x2xf32, #tpu.memory_space<vmem>>) attributes {dimension_semantics = [#tpu.dimension_semantics<parallel>, #tpu.dimension_semantics<arbitrary>], iteration_bounds = array<i64: 2, 1>, scalar_prefetch = 0 : i64, scratch_operands = 0 : i64, tpu.core_type = #tpu.core_type<tc>, window_params = [{transform_indices = @transform_0, window_bounds = array<i64: 16, 128>}, {transform_indices = @transform_1, window_bounds = array<i64: 1, 16, 2>}]} {
    %c0_i32 = arith.constant 0 : i32
    %0 = arith.cmpi eq, %arg1, %c0_i32 : i32
    %1 = arith.extui %0 : i1 to i32
    %c0_i32_0 = arith.constant 0 : i32
    %2 = arith.cmpi ne, %1, %c0_i32_0 : i32
    scf.if %2 {
      %cst_11 = arith.constant 0.000000e+00 : f32
      %20 = vector.broadcast %cst_11 : f32 to vector<16x2xf32>
      %c0_12 = arith.constant 0 : index
      %c0_13 = arith.constant 0 : index
      %c0_14 = arith.constant 0 : index
      %21 = vector.load %arg3[%c0_12, %c0_13, %c0_14] : memref<1x16x2xf32, #tpu.memory_space<vmem>>, vector<1x16x2xf32>
      %22 = vector.shape_cast %21 : vector<1x16x2xf32> to vector<16x2xf32>
      %23 = vector.shape_cast %20 : vector<16x2xf32> to vector<1x16x2xf32>
      tpu.vector_store %arg3[%c0_12, %c0_13, %c0_14], %23 {strides = array<i32>} : memref<1x16x2xf32, #tpu.memory_space<vmem>>, vector<1x16x2xf32>,
    } else {
    }
    %cst = arith.constant 0.000000e+00 : f32
    %3 = vector.broadcast %cst : f32 to vector<16x1xf32>
    %cst_1 = arith.constant 0.000000e+00 : f32
    %4 = vector.broadcast %cst_1 : f32 to vector<16x1xf32>
    %c0 = arith.constant 0 : index
    %c0_2 = arith.constant 0 : index
    %5 = vector.load %arg2[%c0, %c0_2] : memref<16x128xf32, #tpu.memory_space<vmem>>, vector<16x128xf32>
    %cst_3 = arith.constant dense<0.000000e+00> : vector<16xf32>
    %6 = vector.multi_reduction <add>, %5, %cst_3 [1] : vector<16x128xf32> to vector<16xf32>
    %7 = vector.shape_cast %6 : vector<16xf32> to vector<16x1xf32>
    %8 = arith.addf %3, %7 : vector<16x1xf32>
    %9 = arith.mulf %5, %5 : vector<16x128xf32>
    %cst_4 = arith.constant dense<0.000000e+00> : vector<16xf32>
    %10 = vector.multi_reduction <add>, %9, %cst_4 [1] : vector<16x128xf32> to vector<16xf32>
    %11 = vector.shape_cast %10 : vector<16xf32> to vector<16x1xf32>
    %12 = arith.addf %4, %11 : vector<16x1xf32>
    %c0_5 = arith.constant 0 : index
    %c0_6 = arith.constant 0 : index
    %c0_7 = arith.constant 0 : index
    %13 = vector.load %arg3[%c0_5, %c0_6, %c0_7] : memref<1x16x2xf32, #tpu.memory_space<vmem>>, vector<1x16x2xf32>
    %14 = vector.shape_cast %13 : vector<1x16x2xf32> to vector<16x2xf32>
    %15 = tpu.concatenate %8, %12 in 1 : vector<16x1xf32>, vector<16x1xf32> -> vector<16x2xf32>
    %16 = arith.addf %14, %15 : vector<16x2xf32>
    %c0_8 = arith.constant 0 : index
    %c0_9 = arith.constant 0 : index
    %c0_10 = arith.constant 0 : index
    %17 = vector.load %arg3[%c0_8, %c0_9, %c0_10] : memref<1x16x2xf32, #tpu.memory_space<vmem>>, vector<1x16x2xf32>
    %18 = vector.shape_cast %17 : vector<1x16x2xf32> to vector<16x2xf32>
    %19 = vector.shape_cast %16 : vector<16x2xf32> to vector<1x16x2xf32>
    tpu.vector_store %arg3[%c0_8, %c0_9, %c0_10], %19 {strides = array<i32>} : memref<1x16x2xf32, #tpu.memory_space<vmem>>, vector<1x16x2xf32>,
    return
  }
  func.func @transform_0(%arg0: i32, %arg1: i32) -> (i32, i32) {
    %c1_i32 = arith.constant 1 : i32
    %0 = arith.muli %arg0, %c1_i32 : i32
    %c1_i32_0 = arith.constant 1 : i32
    %1 = arith.addi %c1_i32_0, %0 : i32
    %2 = arith.addi %1, %arg1 : i32
    %c0_i32 = arith.constant 0 : i32
    %c0_i32_1 = arith.constant 0 : i32
    return %c0_i32, %2 : i32, i32
  }
  func.func @transform_1(%arg0: i32, %arg1: i32) -> (i32, i32, i32) {
    %c0_i32 = arith.constant 0 : i32
    %c0_i32_0 = arith.constant 0 : i32
    %c0_i32_1 = arith.constant 0 : i32
    return %arg0, %c0_i32, %c0_i32_0 : i32, i32, i32
  }
}

module attributes {stable_mosaic.version = 11 : i64} {
  func.func @_bn_relu_conv_kernel(%arg0: i32, %arg1: i32, %arg2: memref<16x128xf32, #tpu.memory_space<vmem>>, %arg3: memref<16x128xf32, #tpu.memory_space<vmem>>, %arg4: memref<16x128xf32, #tpu.memory_space<vmem>>, %arg5: memref<16x128xf32, #tpu.memory_space<vmem>>, %arg6: memref<16x1xf32, #tpu.memory_space<vmem>>, %arg7: memref<16x1xf32, #tpu.memory_space<vmem>>, %arg8: memref<16x48xf32, #tpu.memory_space<vmem>>, %arg9: memref<16x1xf32, #tpu.memory_space<vmem>>, %arg10: memref<16x128xf32, #tpu.memory_space<vmem>>) attributes {dimension_semantics = [#tpu.dimension_semantics<parallel>, #tpu.dimension_semantics<parallel>], iteration_bounds = array<i64: 2, 1>, scalar_prefetch = 0 : i64, scratch_operands = 0 : i64, tpu.core_type = #tpu.core_type<tc>, window_params = [{transform_indices = @transform_0, window_bounds = array<i64: 16, 128>}, {transform_indices = @transform_1, window_bounds = array<i64: 16, 128>}, {transform_indices = @transform_2, window_bounds = array<i64: 16, 128>}, {transform_indices = @transform_3, window_bounds = array<i64: 16, 128>}, {pipeline_mode = #tpu.pipeline_mode<synchronous>, transform_indices = @transform_4, window_bounds = array<i64: 16, 1>}, {pipeline_mode = #tpu.pipeline_mode<synchronous>, transform_indices = @transform_5, window_bounds = array<i64: 16, 1>}, {pipeline_mode = #tpu.pipeline_mode<synchronous>, transform_indices = @transform_6, window_bounds = array<i64: 16, 48>}, {pipeline_mode = #tpu.pipeline_mode<synchronous>, transform_indices = @transform_7, window_bounds = array<i64: 16, 1>}, {transform_indices = @transform_8, window_bounds = array<i64: 16, 128>}]} {
    %c128_i32 = arith.constant 128 : i32
    %0 = arith.muli %arg1, %c128_i32 : i32
    %c0 = arith.constant 0 : index
    %c0_0 = arith.constant 0 : index
    %1 = vector.load %arg2[%c0, %c0_0] : memref<16x128xf32, #tpu.memory_space<vmem>>, vector<16x128xf32>
    %c0_1 = arith.constant 0 : index
    %c0_2 = arith.constant 0 : index
    %2 = vector.load %arg3[%c0_1, %c0_2] : memref<16x128xf32, #tpu.memory_space<vmem>>, vector<16x128xf32>
    %c0_3 = arith.constant 0 : index
    %c0_4 = arith.constant 0 : index
    %3 = vector.load %arg4[%c0_3, %c0_4] : memref<16x128xf32, #tpu.memory_space<vmem>>, vector<16x128xf32>
    %4 = tpu.concatenate %1, %2, %3 in 1 : vector<16x128xf32>, vector<16x128xf32>, vector<16x128xf32> -> vector<16x384xf32>
    %c0_5 = arith.constant 0 : index
    %c0_6 = arith.constant 0 : index
    %5 = vector.load %arg6[%c0_5, %c0_6] : memref<16x1xf32, #tpu.memory_space<vmem>>, vector<16x1xf32>
    %6 = vector.broadcast %5 : vector<16x1xf32> to vector<16x384xf32>
    %7 = arith.mulf %4, %6 : vector<16x384xf32>
    %c0_7 = arith.constant 0 : index
    %c0_8 = arith.constant 0 : index
    %8 = vector.load %arg7[%c0_7, %c0_8] : memref<16x1xf32, #tpu.memory_space<vmem>>, vector<16x1xf32>
    %9 = vector.broadcast %8 : vector<16x1xf32> to vector<16x384xf32>
    %10 = arith.addf %7, %9 : vector<16x384xf32>
    %cst = arith.constant 0.000000e+00 : f32
    %11 = vector.broadcast %cst : f32 to vector<16x384xf32>
    %12 = arith.maximumf %10, %11 : vector<16x384xf32>
    %13 = tpu.iota {dimensions = array<i32: 1>} : vector<1x384xi32>
    %c128_i32_9 = arith.constant 128 : i32
    %14 = arith.subi %c128_i32_9, %0 : i32
    %15 = vector.broadcast %14 : i32 to vector<1x384xi32>
    %16 = arith.cmpi sge, %13, %15 : vector<1x384xi32>
    %c16_i32 = arith.constant 16 : i32
    %17 = arith.addi %14, %c16_i32 : i32
    %18 = vector.broadcast %17 : i32 to vector<1x384xi32>
    %19 = arith.cmpi slt, %13, %18 : vector<1x384xi32>
    %20 = arith.andi %16, %19 : vector<1x384xi1>
    %cst_10 = arith.constant 0.000000e+00 : f32
    %21 = vector.shape_cast %20 : vector<1x384xi1> to vector<1x384xi1>
    %22 = vector.broadcast %21 : vector<1x384xi1> to vector<16x384xi1>
    %23 = vector.broadcast %cst_10 : f32 to vector<16x384xf32>
    %24 = arith.select %22, %12, %23 : vector<16x384xi1>, vector<16x384xf32>
    %25 = vector.extract_strided_slice %24 {offsets = [0, 126], sizes = [16, 128], strides = [1, 1]} : vector<16x384xf32> to vector<16x128xf32>
    %26 = vector.extract_strided_slice %24 {offsets = [0, 128], sizes = [16, 128], strides = [1, 1]} : vector<16x384xf32> to vector<16x128xf32>
    %27 = vector.extract_strided_slice %24 {offsets = [0, 130], sizes = [16, 128], strides = [1, 1]} : vector<16x384xf32> to vector<16x128xf32>
    %28 = tpu.concatenate %25, %26, %27 in 0 : vector<16x128xf32>, vector<16x128xf32>, vector<16x128xf32> -> vector<48x128xf32>
    %c0_11 = arith.constant 0 : index
    %c0_12 = arith.constant 0 : index
    %29 = vector.load %arg8[%c0_11, %c0_12] : memref<16x48xf32, #tpu.memory_space<vmem>>, vector<16x48xf32>
    %cst_13 = arith.constant dense<0.000000e+00> : vector<16x128xf32>
    %30 = tpu.matmul %29, %28, %cst_13 {dimension_numbers = #tpu.dot_dimension_numbers<[1], [0], [0], [1], [0, 0, 1, 1], [], []>} : vector<16x48xf32>, vector<48x128xf32>, vector<16x128xf32> -> vector<16x128xf32>
    %c0_14 = arith.constant 0 : index
    %c0_15 = arith.constant 0 : index
    %31 = vector.load %arg9[%c0_14, %c0_15] : memref<16x1xf32, #tpu.memory_space<vmem>>, vector<16x1xf32>
    %32 = vector.broadcast %31 : vector<16x1xf32> to vector<16x128xf32>
    %33 = arith.addf %30, %32 : vector<16x128xf32>
    %c0_16 = arith.constant 0 : index
    %c0_17 = arith.constant 0 : index
    %34 = vector.load %arg5[%c0_16, %c0_17] : memref<16x128xf32, #tpu.memory_space<vmem>>, vector<16x128xf32>
    %35 = arith.addf %33, %34 : vector<16x128xf32>
    %36 = tpu.iota {dimensions = array<i32: 1>} : vector<1x128xi32>
    %c16_i32_18 = arith.constant 16 : i32
    %37 = arith.subi %c16_i32_18, %0 : i32
    %38 = vector.broadcast %37 : i32 to vector<1x128xi32>
    %39 = arith.cmpi slt, %36, %38 : vector<1x128xi32>
    %cst_19 = arith.constant 0.000000e+00 : f32
    %40 = vector.shape_cast %39 : vector<1x128xi1> to vector<1x128xi1>
    %41 = vector.broadcast %40 : vector<1x128xi1> to vector<16x128xi1>
    %42 = vector.broadcast %cst_19 : f32 to vector<16x128xf32>
    %43 = arith.select %41, %35, %42 : vector<16x128xi1>, vector<16x128xf32>
    %c0_20 = arith.constant 0 : index
    %c0_21 = arith.constant 0 : index
    %44 = vector.load %arg10[%c0_20, %c0_21] : memref<16x128xf32, #tpu.memory_space<vmem>>, vector<16x128xf32>
    tpu.vector_store %arg10[%c0_20, %c0_21], %43 {strides = array<i32>} : memref<16x128xf32, #tpu.memory_space<vmem>>, vector<16x128xf32>,
    return
  }
  func.func @transform_0(%arg0: i32, %arg1: i32) -> (i32, i32) {
    %c1_i32 = arith.constant 1 : i32
    %0 = arith.muli %arg0, %c1_i32 : i32
    %c1_i32_0 = arith.constant 1 : i32
    %1 = arith.addi %c1_i32_0, %0 : i32
    %c1_i32_1 = arith.constant 1 : i32
    %2 = arith.muli %arg1, %c1_i32_1 : i32
    %3 = arith.addi %1, %2 : i32
    %c1_i32_2 = arith.constant 1 : i32
    %4 = arith.subi %3, %c1_i32_2 : i32
    %c0_i32 = arith.constant 0 : i32
    %c0_i32_3 = arith.constant 0 : i32
    return %c0_i32, %4 : i32, i32
  }
  func.func @transform_1(%arg0: i32, %arg1: i32) -> (i32, i32) {
    %c1_i32 = arith.constant 1 : i32
    %0 = arith.muli %arg0, %c1_i32 : i32
    %c1_i32_0 = arith.constant 1 : i32
    %1 = arith.addi %c1_i32_0, %0 : i32
    %2 = arith.addi %1, %arg1 : i32
    %c0_i32 = arith.constant 0 : i32
    %c0_i32_1 = arith.constant 0 : i32
    return %c0_i32, %2 : i32, i32
  }
  func.func @transform_2(%arg0: i32, %arg1: i32) -> (i32, i32) {
    %c1_i32 = arith.constant 1 : i32
    %0 = arith.muli %arg0, %c1_i32 : i32
    %c1_i32_0 = arith.constant 1 : i32
    %1 = arith.addi %c1_i32_0, %0 : i32
    %c1_i32_1 = arith.constant 1 : i32
    %2 = arith.addi %arg1, %c1_i32_1 : i32
    %c1_i32_2 = arith.constant 1 : i32
    %3 = arith.muli %2, %c1_i32_2 : i32
    %4 = arith.addi %1, %3 : i32
    %c0_i32 = arith.constant 0 : i32
    %c0_i32_3 = arith.constant 0 : i32
    return %c0_i32, %4 : i32, i32
  }
  func.func @transform_3(%arg0: i32, %arg1: i32) -> (i32, i32) {
    %c1_i32 = arith.constant 1 : i32
    %0 = arith.muli %arg0, %c1_i32 : i32
    %c1_i32_0 = arith.constant 1 : i32
    %1 = arith.addi %c1_i32_0, %0 : i32
    %2 = arith.addi %1, %arg1 : i32
    %c0_i32 = arith.constant 0 : i32
    %c0_i32_1 = arith.constant 0 : i32
    return %c0_i32, %2 : i32, i32
  }
  func.func @transform_4(%arg0: i32, %arg1: i32) -> (i32, i32) {
    %c0_i32 = arith.constant 0 : i32
    %c0_i32_0 = arith.constant 0 : i32
    %c0_i32_1 = arith.constant 0 : i32
    return %c0_i32, %c0_i32_0 : i32, i32
  }
  func.func @transform_5(%arg0: i32, %arg1: i32) -> (i32, i32) {
    %c0_i32 = arith.constant 0 : i32
    %c0_i32_0 = arith.constant 0 : i32
    %c0_i32_1 = arith.constant 0 : i32
    return %c0_i32, %c0_i32_0 : i32, i32
  }
  func.func @transform_6(%arg0: i32, %arg1: i32) -> (i32, i32) {
    %c0_i32 = arith.constant 0 : i32
    %c0_i32_0 = arith.constant 0 : i32
    %c0_i32_1 = arith.constant 0 : i32
    return %c0_i32, %c0_i32_0 : i32, i32
  }
  func.func @transform_7(%arg0: i32, %arg1: i32) -> (i32, i32) {
    %c0_i32 = arith.constant 0 : i32
    %c0_i32_0 = arith.constant 0 : i32
    %c0_i32_1 = arith.constant 0 : i32
    return %c0_i32, %c0_i32_0 : i32, i32
  }
  func.func @transform_8(%arg0: i32, %arg1: i32) -> (i32, i32) {
    %c1_i32 = arith.constant 1 : i32
    %0 = arith.muli %arg0, %c1_i32 : i32
    %c1_i32_0 = arith.constant 1 : i32
    %1 = arith.addi %c1_i32_0, %0 : i32
    %2 = arith.addi %1, %arg1 : i32
    %c0_i32 = arith.constant 0 : i32
    %c0_i32_1 = arith.constant 0 : i32
    return %c0_i32, %2 : i32, i32
  }
}

module attributes {stable_mosaic.version = 11 : i64} {
  func.func @_bn_relu_conv_kernel(%arg0: i32, %arg1: i32, %arg2: memref<16x128xf32, #tpu.memory_space<vmem>>, %arg3: memref<16x128xf32, #tpu.memory_space<vmem>>, %arg4: memref<16x128xf32, #tpu.memory_space<vmem>>, %arg5: memref<16x1xf32, #tpu.memory_space<vmem>>, %arg6: memref<16x1xf32, #tpu.memory_space<vmem>>, %arg7: memref<16x48xf32, #tpu.memory_space<vmem>>, %arg8: memref<16x1xf32, #tpu.memory_space<vmem>>, %arg9: memref<16x128xf32, #tpu.memory_space<vmem>>, %arg10: memref<1x16x2xf32, #tpu.memory_space<vmem>>) attributes {dimension_semantics = [#tpu.dimension_semantics<parallel>, #tpu.dimension_semantics<arbitrary>], iteration_bounds = array<i64: 2, 1>, scalar_prefetch = 0 : i64, scratch_operands = 0 : i64, tpu.core_type = #tpu.core_type<tc>, window_params = [{transform_indices = @transform_0, window_bounds = array<i64: 16, 128>}, {transform_indices = @transform_1, window_bounds = array<i64: 16, 128>}, {transform_indices = @transform_2, window_bounds = array<i64: 16, 128>}, {pipeline_mode = #tpu.pipeline_mode<synchronous>, transform_indices = @transform_3, window_bounds = array<i64: 16, 1>}, {pipeline_mode = #tpu.pipeline_mode<synchronous>, transform_indices = @transform_4, window_bounds = array<i64: 16, 1>}, {pipeline_mode = #tpu.pipeline_mode<synchronous>, transform_indices = @transform_5, window_bounds = array<i64: 16, 48>}, {pipeline_mode = #tpu.pipeline_mode<synchronous>, transform_indices = @transform_6, window_bounds = array<i64: 16, 1>}, {transform_indices = @transform_7, window_bounds = array<i64: 16, 128>}, {transform_indices = @transform_8, window_bounds = array<i64: 1, 16, 2>}]} {
    %c128_i32 = arith.constant 128 : i32
    %0 = arith.muli %arg1, %c128_i32 : i32
    %c0 = arith.constant 0 : index
    %c0_0 = arith.constant 0 : index
    %1 = vector.load %arg2[%c0, %c0_0] : memref<16x128xf32, #tpu.memory_space<vmem>>, vector<16x128xf32>
    %c0_1 = arith.constant 0 : index
    %c0_2 = arith.constant 0 : index
    %2 = vector.load %arg3[%c0_1, %c0_2] : memref<16x128xf32, #tpu.memory_space<vmem>>, vector<16x128xf32>
    %c0_3 = arith.constant 0 : index
    %c0_4 = arith.constant 0 : index
    %3 = vector.load %arg4[%c0_3, %c0_4] : memref<16x128xf32, #tpu.memory_space<vmem>>, vector<16x128xf32>
    %4 = tpu.concatenate %1, %2, %3 in 1 : vector<16x128xf32>, vector<16x128xf32>, vector<16x128xf32> -> vector<16x384xf32>
    %c0_5 = arith.constant 0 : index
    %c0_6 = arith.constant 0 : index
    %5 = vector.load %arg5[%c0_5, %c0_6] : memref<16x1xf32, #tpu.memory_space<vmem>>, vector<16x1xf32>
    %6 = vector.broadcast %5 : vector<16x1xf32> to vector<16x384xf32>
    %7 = arith.mulf %4, %6 : vector<16x384xf32>
    %c0_7 = arith.constant 0 : index
    %c0_8 = arith.constant 0 : index
    %8 = vector.load %arg6[%c0_7, %c0_8] : memref<16x1xf32, #tpu.memory_space<vmem>>, vector<16x1xf32>
    %9 = vector.broadcast %8 : vector<16x1xf32> to vector<16x384xf32>
    %10 = arith.addf %7, %9 : vector<16x384xf32>
    %cst = arith.constant 0.000000e+00 : f32
    %11 = vector.broadcast %cst : f32 to vector<16x384xf32>
    %12 = arith.maximumf %10, %11 : vector<16x384xf32>
    %13 = tpu.iota {dimensions = array<i32: 1>} : vector<1x384xi32>
    %c128_i32_9 = arith.constant 128 : i32
    %14 = arith.subi %c128_i32_9, %0 : i32
    %15 = vector.broadcast %14 : i32 to vector<1x384xi32>
    %16 = arith.cmpi sge, %13, %15 : vector<1x384xi32>
    %c16_i32 = arith.constant 16 : i32
    %17 = arith.addi %14, %c16_i32 : i32
    %18 = vector.broadcast %17 : i32 to vector<1x384xi32>
    %19 = arith.cmpi slt, %13, %18 : vector<1x384xi32>
    %20 = arith.andi %16, %19 : vector<1x384xi1>
    %cst_10 = arith.constant 0.000000e+00 : f32
    %21 = vector.shape_cast %20 : vector<1x384xi1> to vector<1x384xi1>
    %22 = vector.broadcast %21 : vector<1x384xi1> to vector<16x384xi1>
    %23 = vector.broadcast %cst_10 : f32 to vector<16x384xf32>
    %24 = arith.select %22, %12, %23 : vector<16x384xi1>, vector<16x384xf32>
    %25 = vector.extract_strided_slice %24 {offsets = [0, 126], sizes = [16, 128], strides = [1, 1]} : vector<16x384xf32> to vector<16x128xf32>
    %26 = vector.extract_strided_slice %24 {offsets = [0, 128], sizes = [16, 128], strides = [1, 1]} : vector<16x384xf32> to vector<16x128xf32>
    %27 = vector.extract_strided_slice %24 {offsets = [0, 130], sizes = [16, 128], strides = [1, 1]} : vector<16x384xf32> to vector<16x128xf32>
    %28 = tpu.concatenate %25, %26, %27 in 0 : vector<16x128xf32>, vector<16x128xf32>, vector<16x128xf32> -> vector<48x128xf32>
    %c0_11 = arith.constant 0 : index
    %c0_12 = arith.constant 0 : index
    %29 = vector.load %arg7[%c0_11, %c0_12] : memref<16x48xf32, #tpu.memory_space<vmem>>, vector<16x48xf32>
    %cst_13 = arith.constant dense<0.000000e+00> : vector<16x128xf32>
    %30 = tpu.matmul %29, %28, %cst_13 {dimension_numbers = #tpu.dot_dimension_numbers<[1], [0], [0], [1], [0, 0, 1, 1], [], []>} : vector<16x48xf32>, vector<48x128xf32>, vector<16x128xf32> -> vector<16x128xf32>
    %c0_14 = arith.constant 0 : index
    %c0_15 = arith.constant 0 : index
    %31 = vector.load %arg8[%c0_14, %c0_15] : memref<16x1xf32, #tpu.memory_space<vmem>>, vector<16x1xf32>
    %32 = vector.broadcast %31 : vector<16x1xf32> to vector<16x128xf32>
    %33 = arith.addf %30, %32 : vector<16x128xf32>
    %34 = tpu.iota {dimensions = array<i32: 1>} : vector<1x128xi32>
    %c16_i32_16 = arith.constant 16 : i32
    %35 = arith.subi %c16_i32_16, %0 : i32
    %36 = vector.broadcast %35 : i32 to vector<1x128xi32>
    %37 = arith.cmpi slt, %34, %36 : vector<1x128xi32>
    %cst_17 = arith.constant 0.000000e+00 : f32
    %38 = vector.shape_cast %37 : vector<1x128xi1> to vector<1x128xi1>
    %39 = vector.broadcast %38 : vector<1x128xi1> to vector<16x128xi1>
    %40 = vector.broadcast %cst_17 : f32 to vector<16x128xf32>
    %41 = arith.select %39, %33, %40 : vector<16x128xi1>, vector<16x128xf32>
    %c0_18 = arith.constant 0 : index
    %c0_19 = arith.constant 0 : index
    %42 = vector.load %arg9[%c0_18, %c0_19] : memref<16x128xf32, #tpu.memory_space<vmem>>, vector<16x128xf32>
    tpu.vector_store %arg9[%c0_18, %c0_19], %41 {strides = array<i32>} : memref<16x128xf32, #tpu.memory_space<vmem>>, vector<16x128xf32>,
    %c0_i32 = arith.constant 0 : i32
    %43 = arith.cmpi eq, %arg1, %c0_i32 : i32
    %44 = arith.extui %43 : i1 to i32
    %c0_i32_20 = arith.constant 0 : i32
    %45 = arith.cmpi ne, %44, %c0_i32_20 : i32
    scf.if %45 {
      %cst_29 = arith.constant 0.000000e+00 : f32
      %58 = vector.broadcast %cst_29 : f32 to vector<16x2xf32>
      %c0_30 = arith.constant 0 : index
      %c0_31 = arith.constant 0 : index
      %c0_32 = arith.constant 0 : index
      %59 = vector.load %arg10[%c0_30, %c0_31, %c0_32] : memref<1x16x2xf32, #tpu.memory_space<vmem>>, vector<1x16x2xf32>
      %60 = vector.shape_cast %59 : vector<1x16x2xf32> to vector<16x2xf32>
      %61 = vector.shape_cast %58 : vector<16x2xf32> to vector<1x16x2xf32>
      tpu.vector_store %arg10[%c0_30, %c0_31, %c0_32], %61 {strides = array<i32>} : memref<1x16x2xf32, #tpu.memory_space<vmem>>, vector<1x16x2xf32>,
    } else {
    }
    %cst_21 = arith.constant dense<0.000000e+00> : vector<16xf32>
    %46 = vector.multi_reduction <add>, %41, %cst_21 [1] : vector<16x128xf32> to vector<16xf32>
    %47 = vector.shape_cast %46 : vector<16xf32> to vector<16x1xf32>
    %48 = arith.mulf %41, %41 : vector<16x128xf32>
    %cst_22 = arith.constant dense<0.000000e+00> : vector<16xf32>
    %49 = vector.multi_reduction <add>, %48, %cst_22 [1] : vector<16x128xf32> to vector<16xf32>
    %50 = vector.shape_cast %49 : vector<16xf32> to vector<16x1xf32>
    %c0_23 = arith.constant 0 : index
    %c0_24 = arith.constant 0 : index
    %c0_25 = arith.constant 0 : index
    %51 = vector.load %arg10[%c0_23, %c0_24, %c0_25] : memref<1x16x2xf32, #tpu.memory_space<vmem>>, vector<1x16x2xf32>
    %52 = vector.shape_cast %51 : vector<1x16x2xf32> to vector<16x2xf32>
    %53 = tpu.concatenate %47, %50 in 1 : vector<16x1xf32>, vector<16x1xf32> -> vector<16x2xf32>
    %54 = arith.addf %52, %53 : vector<16x2xf32>
    %c0_26 = arith.constant 0 : index
    %c0_27 = arith.constant 0 : index
    %c0_28 = arith.constant 0 : index
    %55 = vector.load %arg10[%c0_26, %c0_27, %c0_28] : memref<1x16x2xf32, #tpu.memory_space<vmem>>, vector<1x16x2xf32>
    %56 = vector.shape_cast %55 : vector<1x16x2xf32> to vector<16x2xf32>
    %57 = vector.shape_cast %54 : vector<16x2xf32> to vector<1x16x2xf32>
    tpu.vector_store %arg10[%c0_26, %c0_27, %c0_28], %57 {strides = array<i32>} : memref<1x16x2xf32, #tpu.memory_space<vmem>>, vector<1x16x2xf32>,
    return
  }
  func.func @transform_0(%arg0: i32, %arg1: i32) -> (i32, i32) {
    %c1_i32 = arith.constant 1 : i32
    %0 = arith.muli %arg0, %c1_i32 : i32
    %c1_i32_0 = arith.constant 1 : i32
    %1 = arith.addi %c1_i32_0, %0 : i32
    %c1_i32_1 = arith.constant 1 : i32
    %2 = arith.muli %arg1, %c1_i32_1 : i32
    %3 = arith.addi %1, %2 : i32
    %c1_i32_2 = arith.constant 1 : i32
    %4 = arith.subi %3, %c1_i32_2 : i32
    %c0_i32 = arith.constant 0 : i32
    %c0_i32_3 = arith.constant 0 : i32
    return %c0_i32, %4 : i32, i32
  }
  func.func @transform_1(%arg0: i32, %arg1: i32) -> (i32, i32) {
    %c1_i32 = arith.constant 1 : i32
    %0 = arith.muli %arg0, %c1_i32 : i32
    %c1_i32_0 = arith.constant 1 : i32
    %1 = arith.addi %c1_i32_0, %0 : i32
    %2 = arith.addi %1, %arg1 : i32
    %c0_i32 = arith.constant 0 : i32
    %c0_i32_1 = arith.constant 0 : i32
    return %c0_i32, %2 : i32, i32
  }
  func.func @transform_2(%arg0: i32, %arg1: i32) -> (i32, i32) {
    %c1_i32 = arith.constant 1 : i32
    %0 = arith.muli %arg0, %c1_i32 : i32
    %c1_i32_0 = arith.constant 1 : i32
    %1 = arith.addi %c1_i32_0, %0 : i32
    %c1_i32_1 = arith.constant 1 : i32
    %2 = arith.addi %arg1, %c1_i32_1 : i32
    %c1_i32_2 = arith.constant 1 : i32
    %3 = arith.muli %2, %c1_i32_2 : i32
    %4 = arith.addi %1, %3 : i32
    %c0_i32 = arith.constant 0 : i32
    %c0_i32_3 = arith.constant 0 : i32
    return %c0_i32, %4 : i32, i32
  }
  func.func @transform_3(%arg0: i32, %arg1: i32) -> (i32, i32) {
    %c0_i32 = arith.constant 0 : i32
    %c0_i32_0 = arith.constant 0 : i32
    %c0_i32_1 = arith.constant 0 : i32
    return %c0_i32, %c0_i32_0 : i32, i32
  }
  func.func @transform_4(%arg0: i32, %arg1: i32) -> (i32, i32) {
    %c0_i32 = arith.constant 0 : i32
    %c0_i32_0 = arith.constant 0 : i32
    %c0_i32_1 = arith.constant 0 : i32
    return %c0_i32, %c0_i32_0 : i32, i32
  }
  func.func @transform_5(%arg0: i32, %arg1: i32) -> (i32, i32) {
    %c0_i32 = arith.constant 0 : i32
    %c0_i32_0 = arith.constant 0 : i32
    %c0_i32_1 = arith.constant 0 : i32
    return %c0_i32, %c0_i32_0 : i32, i32
  }
  func.func @transform_6(%arg0: i32, %arg1: i32) -> (i32, i32) {
    %c0_i32 = arith.constant 0 : i32
    %c0_i32_0 = arith.constant 0 : i32
    %c0_i32_1 = arith.constant 0 : i32
    return %c0_i32, %c0_i32_0 : i32, i32
  }
  func.func @transform_7(%arg0: i32, %arg1: i32) -> (i32, i32) {
    %c1_i32 = arith.constant 1 : i32
    %0 = arith.muli %arg0, %c1_i32 : i32
    %c1_i32_0 = arith.constant 1 : i32
    %1 = arith.addi %c1_i32_0, %0 : i32
    %2 = arith.addi %1, %arg1 : i32
    %c0_i32 = arith.constant 0 : i32
    %c0_i32_1 = arith.constant 0 : i32
    return %c0_i32, %2 : i32, i32
  }
  func.func @transform_8(%arg0: i32, %arg1: i32) -> (i32, i32, i32) {
    %c0_i32 = arith.constant 0 : i32
    %c0_i32_0 = arith.constant 0 : i32
    %c0_i32_1 = arith.constant 0 : i32
    return %arg0, %c0_i32, %c0_i32_0 : i32, i32, i32
  }
}

</mosaic_0001>

<bundles_post_ra>
// kernel: residual_block_v2.3
= control target key start
LH: loop header
LB: loop body
LE: loop exit
PB: predicated region body
PF: predicated region fallthrough
CT: control target
= control target key end

     0   :  { %s387_s6 = smov 0   ;;  %s389_s7 = smov 0   ;;  %s456_s0 = inlined_call_operand.vmem [shape: f32[16,512], index: 0, kind: input, shape index: {}]   ;;  %s457_s1 = inlined_call_operand.vmem [shape: f32[2,16,2], index: 1, kind: output, shape index: {}]  }
   0x1   :  { %s391_s8 = smov 0   ;;  %s393_s9 = smov 0  }
   0x2   :  { %s395_s10 = smov 0  }
   0x3 LB: > { %s23_s11 = sadd.s32 1, %s370_s9  ;;  %p41_p1 = scmp.ne.s32.totalorder %s362_s7, %s358_s6  ;;  %s374_s10 = sphi %s395_s10, %s11_s10   ;;  %s370_s9 = sphi %s393_s9, %s461_s9   ;;  %s366_s8 = sphi %s391_s8, %s460_s8   ;;  %s362_s7 = sphi %s389_s7, %s459_s7   ;;  %s358_s6 = sphi %s387_s6, %s458_s6  }
   0x4   : > { %p25_p0 = scmp.ge.s32.totalorder %s23_s11, 2  ;;  %p42_p2 = scmp.eq.s32.totalorder %s374_s10, 0 }
   0x5   : > { %s34_s15 = sadd.s32 1, %s362_s7  ;;  %p283_p5 = scmp.ge.s32.totalorder %s374_s10, 2 }
   0x6   : > { %s416_s12 = scalar_select %p25_p0, 0, %s23_s11  }
   0x7   : > { %p43_p3 = por %p42_p2, %p41_p1 }
   0x8   : > { %s29_s13 = sadd.s32 1, %s416_s12  ;;  %93 = sbr.rel (%p283_p5) target bundleno = 19 (0x13), region = 16 }
   0x9   : > { %s31_s14 = ssub.s32 %s23_s11, %s29_s13 }
   0xa   : > { %p32_p4 = scmp.eq.s32.totalorder %s31_s14, 0 }
   0xc   : > { %s421_s16 = scalar_select %p32_p4, %s362_s7, %s34_s15  }
   0xd   : > { %96 = sbr.rel (!%p43_p3) target bundleno = 19 (0x13), region = 20  ;;  %s98_s17 = sand.u32 (%p43_p3), 1, %s362_s7  }
   0xe   : > { %s285_s18 = sshll.u32 (%p43_p3), %s370_s9, 3  ;;  %s284_s19 = sshll.u32 (%p43_p3), %s98_s17, 4 }
   0xf   : > { %s234_s22 = scalar_lea.vmem (%p43_p3), %s456_s0, %s285_s18  ;;  %s100_s23 = scalar_lea.vmem (%p43_p3), [#allocation2], %s284_s19 }
  0x10   : > { %v286_v0 = vld [vmem:[%s234_s22 + $0x8] sm:$0xff] (%p43_p3) }
  0x11   : > { %v287_v1 = vld [vmem:[%s234_s22 + $0x28] sm:$0xff] (%p43_p3)  ;;  %136 = vst [vmem:[%s100_s23] sm:$0xff] (%p43_p3), %v286_v0 }
  0x12   : > { %138 = vst [vmem:[%s100_s23 + $0x8] sm:$0xff] %v287_v1 }
  0x13 PF: > { %p288_p6 = scmp.ge.s32.totalorder %s374_s10, 1  ;;  %p143_p7 = scmp.lt.s32.totalorder %s374_s10, 3 }
  0x15   : > { %p144_p8 = pnand %p288_p6, %p143_p7 }
  0x16   : > { %s150_s24 = sand.u32 (!%p144_p8), 1, %s358_s6   ;;  %p171_p9 = scmp.lt.s32.totalorder (!%p144_p8), %s366_s8, 1 }
  0x17   : > { %147 = sbr.rel (%p144_p8) target bundleno = 159 (0x9f), region = 58  ;;  %s289_s25 = sshll.u32 (!%p144_p8), %s150_s24, 4 }
  0x18   : > { %s152_s26 = scalar_lea.vmem (!%p144_p8), [#allocation2], %s289_s25 }
  0x1c   : > { %v183_v2 = vld [vmem:[%s152_s26] sm:$0xff]  ;;  %v184_v4 = vld [vmem:[%s152_s26 + $0x8] sm:$0xff]  ;;  %s463_s8 = smov (!%p171_p9, %s366_s8), 1  ;;  %vm180_vm0 = vcmask 15360   ;;  %v376_v6 = vmov 0.0   ;;  %vm201_vm1 = vcmask 7168  }
  0x1d   : > { %185 = vadd.xlane.f32.xlu0 %v183_v2  ;;  %v191_v3 = vmul.f32 %v183_v2, %v183_v2  ;;  %v192_v5 = vmul.f32 %v184_v4, %v184_v4  ;;  %s294_s27 = sshll.u32 %s463_s8, 4 }
  0x1e   : > { %s175_s30 = scalar_lea.vmem %s457_s1, %s294_s27 }
  0x1f   : > { %193 = vadd.xlane.f32.xlu1 %v191_v3  ;;  %181 = vst.msk [vmem:[%s175_s30] sm:$0xff] %vm180_vm0, %v376_v6 }
  0x20   : > { %182 = vst.msk [vmem:[%s175_s30 + $0x8] sm:$0xff] %vm180_vm0, %v376_v6 }
  0x25   : > { %187 = vadd.xlane.f32.xlu0 %v184_v4 }
  0x26   : > { %v199_v8 = vld [vmem:[%s175_s30] sm:$0xff] }
  0x27   : > { %195 = vadd.xlane.f32.xlu1 %v192_v5  ;;  %v200_v13 = vld [vmem:[%s175_s30 + $0x8] sm:$0xff] }
  0x90   : > { %v186_v7 = vpop.xlane.xlu0 %185 }
  0x92   : > { %v194_v9 = vpop.xlane.xlu1 %193 }
  0x93   : > { %v202_v10 = vsel %vm201_vm1, %v186_v7, %v194_v9 }
  0x94   : > { %v204_v11 = vadd.f32 %v202_v10, %v199_v8 }
  0x96   : > { %207 = vst.msk [vmem:[%s175_s30] sm:$0xff] %vm180_vm0, %v204_v11 }
  0x98   : > { %v188_v12 = vpop.xlane.xlu0 %187 }
  0x9a   : > { %v196_v14 = vpop.xlane.xlu1 %195 }
  0x9b   : > { %v203_v15 = vsel %vm201_vm1, %v188_v12, %v196_v14 }
  0x9c   : > { %v205_v16 = vadd.f32 %v203_v15, %v200_v13 }
  0x9e   : > { %208 = vst.msk [vmem:[%s175_s30 + $0x8] sm:$0xff] %vm180_vm0, %v205_v16 }
  0x9f PF: > { %s11_s10 = sadd.s32 1, %s374_s10   ;;  %s458_s6 = smov %s362_s7 }
  0xa0   : > { %p8_p10 = scmp.ge.s32.totalorder %s11_s10, 4   ;;  %s459_s7 = smov %s421_s16 }
  0xa1   : > { %s460_s8 = smov %s370_s9  ;;  %s461_s9 = smov %s416_s12 }
  0xa2   :  { %10 = sbr.rel (!%p8_p10) target bundleno = 3 (0x3), region = 101 }

// kernel: residual_block_v2.5
= control target key start
LH: loop header
LB: loop body
LE: loop exit
PB: predicated region body
PF: predicated region fallthrough
CT: control target
= control target key end

     0   :  { %s1202_s26 = smov 0   ;;  %s1204_s2 = smov 0   ;;  %s1323_s0 = inlined_call_operand.vmem [shape: f32[16,512], index: 0, kind: input, shape index: {}, may-alias: {0,1,2}]   ;;  %s1324_s1 = inlined_call_operand.vmem [shape: f32[16,512], index: 1, kind: input, shape index: {}, may-alias: {0,1,2}]   ;;  %s1325_s2 = inlined_call_operand.vmem [shape: f32[16,512], index: 2, kind: input, shape index: {}, may-alias: {0,1,2}]   ;;  %s1326_s3 = inlined_call_operand.vmem [shape: f32[16,512], index: 3, kind: input, shape index: {}]   ;;  %s1327_s4 = inlined_call_operand.vmem [shape: f32[16,1], index: 4, kind: input, shape index: {}]   ;;  %s1328_s5 = inlined_call_operand.vmem [shape: f32[16,1], index: 5, kind: input, shape index: {}]   ;;  %s1329_s6 = inlined_call_operand.vmem [shape: f32[16,48], index: 6, kind: input, shape index: {}]   ;;  %s1330_s7 = inlined_call_operand.vmem [shape: f32[16,1], index: 7, kind: input, shape index: {}]   ;;  %s1331_s8 = inlined_call_operand.vmem [shape: f32[16,512], index: 8, kind: output, shape index: {}]  }
   0x1   :  { %s1206_s27 = smov 0   ;;  %s1208_s28 = smov 0  }
   0x2   :  { %s1210_s29 = smov 0  }
   0x3 LB: > { %s936_s30 = sadd.s32 4294967295, %s1150_s29   ;;  %s30_s9 = sadd.s32 1, %s1146_s28  ;;  %s1150_s29 = sphi %s1210_s29, %s18_s29   ;;  %s1146_s28 = sphi %s1208_s28, %s1337_s28   ;;  %s1142_s27 = sphi %s1206_s27, %s1336_s27   ;;  %s1138_s2 = sphi %s1204_s2, %s1335_s2   ;;  %s1134_s26 = sphi %s1202_s26, %s1334_s26  }
   0x4   : > { %p32_p0 = scmp.ge.s32.totalorder %s30_s9, 2  ;;  %p51_p1 = scmp.eq.s32.totalorder %s1150_s29, 0 }
   0x5   : > { %s73_s11 = sadd.s32 1, %s1138_s2  ;;  %p80_p2 = scmp.ne.s32.totalorder %s1138_s2, %s1134_s26 }
   0x6   : > { %s1229_s10 = scalar_select %p32_p0, 0, %s30_s9  }
   0x7   : > { %p1236_p4 = por %p80_p2, %p51_p1  ;;  %p260_p5 = scmp.eq.s32.totalorder %s936_s30, 1 }
   0x8   : > { %s37_s12 = sadd.s32 1, %s1229_s10  ;;  %p941_p7 = scmp.ge.s32.totalorder %s1150_s29, 2 }
   0x9   : > { %s70_s13 = ssub.s32 %s30_s9, %s37_s12  ;;  %p1243_p6 = por %p260_p5, %p80_p2 }
   0xa   : > { %p71_p3 = scmp.eq.s32.totalorder %s70_s13, 0  ;;  %294 = sbr.rel (%p941_p7) target bundleno = 27 (0x1b), region = 32 }
   0xc   : > { %s1241_s15 = scalar_select %p71_p3, %s1138_s2, %s73_s11  }
   0xf   : > { %346 = sbr.rel (!%p1236_p4) target bundleno = 21 (0x15), region = 74  ;;  %s348_s17 = sand.u32 (%p1236_p4), 1, %s1138_s2  }
  0x10   : > { %s946_s18 = sshll.u32 (%p1236_p4), %s1146_s28, 3  ;;  %s945_s19 = sshll.u32 (%p1236_p4), %s348_s17, 4 }
  0x11   : > { %s829_s22 = scalar_lea.vmem (%p1236_p4), %s1324_s1, %s946_s18  ;;  %s350_s23 = scalar_lea.vmem (%p1236_p4), [#allocation3], %s945_s19 }
  0x12   : > { %v947_v0 = vld [vmem:[%s829_s22 + $0x8] sm:$0xff] (%p1236_p4) }
  0x13   : > { %v948_v1 = vld [vmem:[%s829_s22 + $0x28] sm:$0xff] (%p1236_p4)  ;;  %386 = vst [vmem:[%s350_s23] sm:$0xff] (%p1236_p4), %v947_v0 }
  0x14   : > { %388 = vst [vmem:[%s350_s23 + $0x8] sm:$0xff] %v948_v1 }
  0x15 PF: > { %443 = sbr.rel (!%p1236_p4) target bundleno = 27 (0x1b), region = 150  ;;  %s445_s0 = sand.u32 (%p1236_p4), 1, %s1138_s2  }
  0x16   : > { %s954_s24 = sshll.u32 (%p1236_p4), %s1146_s28, 3  ;;  %s953_s25 = sshll.u32 (%p1236_p4), %s445_s0, 4 }
  0x17   : > { %s841_s11 = scalar_lea.vmem (%p1236_p4), %s1326_s3, %s954_s24  ;;  %s447_s12 = scalar_lea.vmem (%p1236_p4), [#allocation5], %s953_s25 }
  0x18   : > { %v955_v2 = vld [vmem:[%s841_s11 + $0x8] sm:$0xff] (%p1236_p4) }
  0x19   : > { %v956_v3 = vld [vmem:[%s841_s11 + $0x28] sm:$0xff] (%p1236_p4)  ;;  %483 = vst [vmem:[%s447_s12] sm:$0xff] (%p1236_p4), %v955_v2 }
  0x1a   : > { %485 = vst [vmem:[%s447_s12 + $0x8] sm:$0xff] %v956_v3 }
  0x1b PF: > { %p957_p8 = scmp.ge.s32.totalorder %s1150_s29, 1  ;;  %p490_p9 = scmp.lt.s32.totalorder %s1150_s29, 3 }
  0x1d   : > { %p491_p10 = pnand %p957_p8, %p490_p9 }
  0x1e   : > { %s504_s23 = sand.u32 (!%p491_p10), 1, %s1134_s26   ;;  %s1154_s26 = smov (!%p491_p10), 124  }
  0x1f   : > { %494 = sbr.rel (%p491_p10) target bundleno = 550 (0x226), region = 188  ;;  %s1277_s0 = sshll.u32 (!%p491_p10), %s504_s23, 4 }
  0x20   : > { %s506_s24 = scalar_lea.vmem (!%p491_p10), [#allocation3], %s1277_s0  ;;  %s1155_s25 = smov (!%p491_p10), 126  }
  0x21   : > { %s1156_s30 = smov (!%p491_p10), 2   ;;  %s520_s20 = scalar_lea.vmem (!%p491_p10), [#allocation5], %s1277_s0 }
  0x22   : > { %s561_s21 = scalar_lea.vmem (!%p491_p10), [#allocation6], %s1277_s0 }
  0x24   : > { %v600_v4 = vld [vmem:[%s1328_s5 + $0x8] sm:$0xff]  ;;  %v1152_v6 = vmov 0   ;;  %v599_v7 = vld [vmem:[%s1328_s5] sm:$0xff]  ;;  %v623_v9 = vlaneseq  ;;  %v1153_v22 = vmov 0.0   ;;  %vm668_vm1 = vcmask 1014784   ;;  %s966_s22 = sshll.u32 (%p1243_p6), %s1142_s27, 3 }
  0x25   : > { %v582_v5 = vld [vmem:[%s1327_s4 + $0x8] sm:$0xff]  ;;  %1055 = vset.pattern.permute.xlu1 %v1152_v6  ;;  %1054 = vset.pattern.permute.xlu0 %v1152_v6  ;;  %v581_v8 = vld [vmem:[%s1327_s4] sm:$0xff]  ;;  %vm707_vm2 = vcmask 15360   ;;  %vm718_vm3 = vcmask 392192  }
  0x26   : > { %608 = vperm.xlu1 %1055, %v600_v4   ;;  %590 = vperm.xlu0 %1054, %v582_v5   ;;  %v1279_v10 = vand.u32 127, %v623_v9  ;;  %v578_v11 = vld [vmem:[%s506_s24 + $0x8] sm:$0xff]  ;;  %v577_v18 = vld [vmem:[%s506_s24] sm:$0xff] }
  0x27   : > { %v674_v42 = vld [vmem:[%s1330_s7 + $0x8] sm:$0xff]  ;;  %v673_v44 = vld [vmem:[%s1330_s7] sm:$0xff] }
  0x28   : > { %v625_v14 = vadd.s32 128, %v1279_v10  ;;  %v671_v63 = vld [vmem:[%s1329_s6] sm:$0xff]  ;;  %v672_v0 = vld [vmem:[%s1329_s6 + $0x8] sm:$0xff]  ;;  %vm754_vm4 = vcmp.lt.s32.totalorder %v1279_v10, 16 }
  0x29   : > { %v748_v5 = vld [vmem:[%s520_s20] sm:$0xff] }
  0x2a   : > { %vm635_vm0 = vcmp.lt.s32.totalorder %v625_v14, 144 }
  0x2e   : > { %603 = vperm.xlu1 %1055, %v599_v7   ;;  %585 = vperm.xlu0 %1054, %v581_v8   ;;  %v749_v7 = vld [vmem:[%s520_s20 + $0x8] sm:$0xff] }
  0x98   : > { %v609_v12 = vpop.permute.xlu1 %608  ;;  %v591_v13 = vpop.permute.xlu0 %590 }
  0x99   : > { %v597_v15 = vmul.f32 %v591_v13, %v578_v11 }
  0x9b   : > { %v615_v16 = vadd.f32 %v609_v12, %v597_v15 }
  0x9d   : > { %v621_v17 = vmax.f32 %v615_v16, 0.0 }
  0x9f   : > { %v650_v19 = vsel %vm635_vm0, %v621_v17, 0.0 }
  0xa0   : > { %v586_v20 = vpop.permute.xlu0 %585  ;;  %v1056_v21 = vpack.i.bf16 0.0, %v650_v19  ;;  %v1081_v23 = vpack.i.bf16 %v650_v19, %v1153_v22  ;;  %v604_v25 = vpop.permute.xlu1 %603 }
  0xa1   : > { %v594_v24 = vmul.f32 %v586_v20, %v577_v18 }
  0xa2   : > { %1057 = vrot.lane.b32.xlu2 %v1056_v21, %s1154_s26 }
  0xa3   : > { %v612_v26 = vadd.f32 %v604_v25, %v594_v24 }
  0xa5   : > { %v618_v27 = vmax.f32 %v612_v26, 0.0 }
  0xa7   : > { %v647_v28 = vsel %vm635_vm0, %v618_v27, 0.0 }
  0xa8   : > { %v1066_v29 = vpack.i.bf16 %v647_v28, %v650_v19  ;;  %v1061_v30 = vpack.i.bf16 0.0, %v647_v28  ;;  %v1091_v31 = vpack.i.bf16 %v647_v28, %v1153_v22 }
  0xaa   : > { %1067 = vrot.lane.b32.xlu0 %v1066_v29, %s1155_s25  ;;  %1062 = vrot.lane.b32.xlu2 %v1061_v30, %s1154_s26  ;;  %s865_s26 = scalar_lea.vmem (%p1243_p6), %s1331_s8, %s966_s22 }
  0xfc   : > { %v1058_v32 = vpop.permute.xlu2 %1057 }
  0xfd   : > { %v1060_v33 = vunpack.i.h.bf16 %v1058_v32  ;;  %v1059_v34 = vunpack.i.l.bf16 %v1058_v32 }
  0xff   : > { %v670_v35 = vsel %vm668_vm1, %v1059_v34, %v1060_v33 }
 0x100   : > { %v1076_v36 = vpack.i.bf16 %v670_v35, %v1059_v34 }
 0x102   : > { %1077 = vrot.lane.b32.xlu1 %v1076_v36, %s1156_s30 }
 0x104   : > { %v1063_v37 = vpop.permute.xlu2 %1062 }
 0x105   : > { %v1065_v38 = vunpack.i.h.bf16 %v1063_v37  ;;  %v1064_v39 = vunpack.i.l.bf16 %v1063_v37 }
 0x107   : > { %v669_v40 = vsel %vm668_vm1, %v1064_v39, %v1065_v38 }
 0x108   : > { %v1086_v41 = vpack.i.bf16 %v669_v40, %v1064_v39 }
 0x10a   : > { %1082 = vrot.lane.b32.xlu1 %v1081_v23, %s1156_s30  ;;  %1087 = vrot.lane.b32.xlu2 %v1086_v41, %s1156_s30 }
 0x112   : > { %682 = vperm.xlu1 %1055, %v674_v42   ;;  %1092 = vrot.lane.b32.xlu2 %v1091_v31, %s1156_s30 }
 0x11c   : > { %v1068_v43 = vpop.permute.xlu0 %1067 }
 0x11d   : > { %1072 = vrot.lane.b32.xlu0 %v1068_v43, %s1156_s30 }
 0x125   : > { %677 = vperm.xlu0 %1054, %v673_v44  }
 0x164   : > { %v1088_v45 = vpop.permute.xlu2 %1087 }
 0x165   : > { %v1090_v47 = vunpack.i.h.bf16 %v1088_v45  ;;  %v1089_v48 = vunpack.i.l.bf16 %v1088_v45 }
 0x167   : > { %v710_v52 = vsel %vm707_vm2, %v1089_v48, %v1090_v47 }
 0x16c   : > { %v1093_v55 = vpop.permute.xlu2 %1092 }
 0x16d   : > { %v1095_v60 = vunpack.i.h.bf16 %v1093_v55  ;;  %v1094_v61 = vunpack.i.l.bf16 %v1093_v55 }
 0x16f   : > { %v708_v1 = vsel %vm707_vm2, %v1094_v61, %v1095_v60 }
 0x174   : > { %v1078_v46 = vpop.permute.xlu1 %1077 }
 0x175   : > { %v1080_v49 = vunpack.i.h.bf16 %v1078_v46  ;;  %v1079_v50 = vunpack.i.l.bf16 %v1078_v46 }
 0x177   : > { %v711_v51 = vsel %vm707_vm2, %v1079_v50, %v1080_v49 }
 0x178   : > { %735 = vmatpush.msra.mxu0 %v711_v51  ;;  %971 = vmatpush.msra.mxu1 %v711_v51 }
 0x17a   : > { %736 = vmatpush.msra.mxu0 %v710_v52  ;;  %972 = vmatpush.msra.mxu1 %v710_v52 }
 0x17c   : > { %v1083_v53 = vpop.permute.xlu1 %1082 }
 0x17d   : > { %v1085_v57 = vunpack.i.h.bf16 %v1083_v53  ;;  %v1084_v58 = vunpack.i.l.bf16 %v1083_v53 }
 0x17f   : > { %v709_v62 = vsel %vm707_vm2, %v1084_v58, %v1085_v57 }
 0x184   : > { %v683_v2 = vpop.permute.xlu1 %682 }
 0x18f   : > { %v1073_v54 = vpop.permute.xlu0 %1072 }
 0x190   : > { %v1074_v56 = vunpack.i.l.bf16 %v1073_v54  ;;  %v1075_v59 = vunpack.i.h.bf16 %v1073_v54 }
 0x192   : > { %737 = vmatpush.msra.mxu0 %v1074_v56  ;;  %973 = vmatpush.msra.mxu1 %v1074_v56 }
 0x194   : > { %738 = vmatpush.msra.mxu0 %v1075_v59  ;;  %974 = vmatpush.msra.mxu1 %v1075_v59 }
 0x196   : > { %739 = vmatpush.msra.mxu0 %v709_v62  ;;  %975 = vmatpush.msra.mxu1 %v709_v62 }
 0x197   : > { %v678_v3 = vpop.permute.xlu0 %677 }
 0x198   : > { %740 = vmatpush.msra.mxu0 %v708_v1  ;;  %976 = vmatpush.msra.mxu1 %v708_v1 }
 0x199   : > { %963 = vmatmul.msk.f32.vlgmr.msra.gmra.mxu0 %vm718_vm3, %v671_v63  ;;  %964 = vmatmul.msk.f32.vlgmr.msra.gmra.mxu1 %vm718_vm3, %v672_v0 }
 0x216   : > { %v742_v4 = vpop.f32.mrf.mxu0  ;;  %v745_v6 = vpop.f32.mrf.mxu1 }
 0x217   : > { %v743_v8 = vadd.f32 %v742_v4, %v678_v3  ;;  %v746_v9 = vadd.f32 %v745_v6, %v683_v2 }
 0x219   : > { %v750_v11 = vadd.f32 %v748_v5, %v743_v8  ;;  %v751_v12 = vadd.f32 %v749_v7, %v746_v9  ;;  %767 = sbr.rel (!%p1243_p6) target bundleno = 550 (0x226), region = 208 }
 0x21b   : > { %v757_v13 = vsel %vm754_vm4, %v750_v11, 0.0  ;;  %v758_v14 = vsel %vm754_vm4, %v751_v12, 0.0 }
 0x21c   : > { %759 = vst [vmem:[%s561_s21] sm:$0xff] %v757_v13 }
 0x21d   : > { %760 = vst [vmem:[%s561_s21 + $0x8] sm:$0xff] %v758_v14 }
 0x223   : > { %v802_v15 = vld [vmem:[%s561_s21] sm:$0xff] }
 0x224   : > { %v804_v16 = vld [vmem:[%s561_s21 + $0x8] sm:$0xff]  ;;  %967 = vst [vmem:[%s865_s26 + $0x8] sm:$0xff] %v802_v15 }
 0x225   : > { %968 = vst [vmem:[%s865_s26 + $0x28] sm:$0xff] %v804_v16 }
 0x226 PF: > { %s18_s29 = sadd.s32 1, %s1150_s29   ;;  %s1334_s26 = smov %s1138_s2 }
 0x227   : > { %p15_p11 = scmp.ge.s32.totalorder %s18_s29, 4   ;;  %s1335_s2 = smov %s1241_s15 }
 0x228   : > { %s1336_s27 = smov %s1146_s28  ;;  %s1337_s28 = smov %s1229_s10 }
 0x229   :  { %17 = sbr.rel (!%p15_p11) target bundleno = 3 (0x3), region = 301 }

// kernel: residual_block_v2.4
= control target key start
LH: loop header
LB: loop body
LE: loop exit
PB: predicated region body
PF: predicated region fallthrough
CT: control target
= control target key end

     0   :  { %s1180_s26 = smov 0   ;;  %s1182_s2 = smov 0   ;;  %s1304_s0 = inlined_call_operand.vmem [shape: f32[16,512], index: 0, kind: input, shape index: {}, may-alias: {0,1,2}]   ;;  %s1305_s1 = inlined_call_operand.vmem [shape: f32[16,512], index: 1, kind: input, shape index: {}, may-alias: {0,1,2}]   ;;  %s1306_s2 = inlined_call_operand.vmem [shape: f32[16,512], index: 2, kind: input, shape index: {}, may-alias: {0,1,2}]   ;;  %s1307_s3 = inlined_call_operand.vmem [shape: f32[16,1], index: 3, kind: input, shape index: {}]   ;;  %s1308_s4 = inlined_call_operand.vmem [shape: f32[16,1], index: 4, kind: input, shape index: {}]   ;;  %s1309_s5 = inlined_call_operand.vmem [shape: f32[16,48], index: 5, kind: input, shape index: {}]   ;;  %s1310_s6 = inlined_call_operand.vmem [shape: f32[16,1], index: 6, kind: input, shape index: {}]   ;;  %s1311_s7 = inlined_call_operand.vmem [shape: f32[16,512], index: 7, kind: output, shape index: {0}]   ;;  %s1312_s8 = inlined_call_operand.vmem [shape: f32[2,16,2], index: 8, kind: output, shape index: {1}]  }
   0x1   :  { %s1184_s27 = smov 0   ;;  %s1186_s28 = smov 0  }
   0x2   :  { %s1188_s29 = smov 0  }
   0x3 LB: > { %s916_s30 = sadd.s32 4294967295, %s1128_s29   ;;  %s31_s9 = sadd.s32 1, %s1124_s28  ;;  %s1128_s29 = sphi %s1188_s29, %s19_s29   ;;  %s1124_s28 = sphi %s1186_s28, %s1317_s28   ;;  %s1120_s27 = sphi %s1184_s27, %s1316_s27   ;;  %s1116_s2 = sphi %s1182_s2, %s1315_s2   ;;  %s1112_s26 = sphi %s1180_s26, %s1314_s26  }
   0x4   : > { %p33_p0 = scmp.ge.s32.totalorder %s31_s9, 2  ;;  %p52_p1 = scmp.eq.s32.totalorder %s1128_s29, 0 }
   0x5   : > { %s74_s11 = sadd.s32 1, %s1116_s2  ;;  %p81_p2 = scmp.ne.s32.totalorder %s1116_s2, %s1112_s26 }
   0x6   : > { %s1207_s10 = scalar_select %p33_p0, 0, %s31_s9  }
   0x7   : > { %p83_p4 = por %p81_p2, %p52_p1  ;;  %p231_p5 = scmp.eq.s32.totalorder %s916_s30, 1 }
   0x8   : > { %s38_s12 = sadd.s32 1, %s1207_s10  ;;  %p921_p7 = scmp.ge.s32.totalorder %s1128_s29, 2 }
   0x9   : > { %s71_s13 = ssub.s32 %s31_s9, %s38_s12  ;;  %p1217_p6 = por %p231_p5, %p81_p2 }
   0xa   : > { %p72_p3 = scmp.eq.s32.totalorder %s71_s13, 0  ;;  %291 = sbr.rel (%p921_p7) target bundleno = 21 (0x15), region = 32 }
   0xc   : > { %s1215_s14 = scalar_select %p72_p3, %s1116_s2, %s74_s11  }
   0xf   : > { %343 = sbr.rel (!%p83_p4) target bundleno = 21 (0x15), region = 74  ;;  %s345_s16 = sand.u32 (%p83_p4), 1, %s1116_s2  }
  0x10   : > { %s926_s17 = sshll.u32 (%p83_p4), %s1124_s28, 3  ;;  %s925_s18 = sshll.u32 (%p83_p4), %s345_s16, 4 }
  0x11   : > { %s812_s21 = scalar_lea.vmem (%p83_p4), %s1305_s1, %s926_s17  ;;  %s347_s22 = scalar_lea.vmem (%p83_p4), [#allocation3], %s925_s18 }
  0x12   : > { %v927_v0 = vld [vmem:[%s812_s21 + $0x8] sm:$0xff] (%p83_p4) }
  0x13   : > { %v928_v1 = vld [vmem:[%s812_s21 + $0x28] sm:$0xff] (%p83_p4)  ;;  %383 = vst [vmem:[%s347_s22] sm:$0xff] (%p83_p4), %v927_v0 }
  0x14   : > { %385 = vst [vmem:[%s347_s22 + $0x8] sm:$0xff] %v928_v1 }
  0x15 PF: > { %p933_p8 = scmp.ge.s32.totalorder %s1128_s29, 1  ;;  %p439_p9 = scmp.lt.s32.totalorder %s1128_s29, 3 }
  0x17   : > { %p440_p10 = pnand %p933_p8, %p439_p9 }
  0x18   : > { %s453_s13 = sand.u32 (!%p440_p10), 1, %s1112_s26   ;;  %s1131_s26 = smov (!%p440_p10), 124  }
  0x19   : > { %443 = sbr.rel (%p440_p10) target bundleno = 660 (0x294), region = 150  ;;  %s1242_s16 = sshll.u32 (!%p440_p10), %s453_s13, 4 }
  0x1a   : > { %s455_s17 = scalar_lea.vmem (!%p440_p10), [#allocation3], %s1242_s16  ;;  %s1132_s18 = smov (!%p440_p10), 126  }
  0x1b   : > { %s1133_s19 = smov (!%p440_p10), 2   ;;  %p515_p11 = scmp.lt.s32.totalorder (!%p440_p10), %s1120_s27, 1 }
  0x1e   : > { %v546_v2 = vld [vmem:[%s1308_s4 + $0x8] sm:$0xff]  ;;  %v1130_v4 = vmov 0   ;;  %v545_v5 = vld [vmem:[%s1308_s4] sm:$0xff]  ;;  %v569_v7 = vlaneseq  ;;  %vm614_vm1 = vcmask 1014784   ;;  %v1134_v37 = vmov 0.0   ;;  %s516_s9 = scalar_select %p515_p11, %s1120_s27, 1 }
  0x1f   : > { %v528_v3 = vld [vmem:[%s1307_s3 + $0x8] sm:$0xff]  ;;  %1033 = vset.pattern.permute.xlu1 %v1130_v4  ;;  %1032 = vset.pattern.permute.xlu0 %v1130_v4  ;;  %v527_v6 = vld [vmem:[%s1307_s3] sm:$0xff]  ;;  %vm653_vm2 = vcmask 15360   ;;  %vm664_vm3 = vcmask 392192   ;;  %vm721_vm5 = vcmask 7168  }
  0x20   : > { %554 = vperm.xlu1 %1033, %v546_v2   ;;  %536 = vperm.xlu0 %1032, %v528_v3   ;;  %v1244_v8 = vand.u32 127, %v569_v7  ;;  %v524_v9 = vld [vmem:[%s455_s17 + $0x8] sm:$0xff]  ;;  %v523_v16 = vld [vmem:[%s455_s17] sm:$0xff]  ;;  %s948_s11 = sshll.u32 %s516_s9, 4 }
  0x21   : > { %v620_v39 = vld [vmem:[%s1310_s6 + $0x8] sm:$0xff]  ;;  %v619_v42 = vld [vmem:[%s1310_s6] sm:$0xff]  ;;  %s1269_s17 = scalar_lea.vmem %s1312_s8, %s948_s11 }
  0x22   : > { %v571_v12 = vadd.s32 128, %v1244_v8  ;;  %v617_v61 = vld [vmem:[%s1309_s5] sm:$0xff]  ;;  %v618_v62 = vld [vmem:[%s1309_s5 + $0x8] sm:$0xff]  ;;  %707 = vst.msk [vmem:[%s1269_s17] sm:$0xff] %vm653_vm2, %v1134_v37  ;;  %vm696_vm4 = vcmp.lt.s32.totalorder %v1244_v8, 16 }
  0x23   : > { %708 = vst.msk [vmem:[%s1269_s17 + $0x8] sm:$0xff] %vm653_vm2, %v1134_v37 }
  0x24   : > { %vm581_vm0 = vcmp.lt.s32.totalorder %v571_v12, 144 }
  0x28   : > { %549 = vperm.xlu1 %1033, %v545_v5   ;;  %531 = vperm.xlu0 %1032, %v527_v6  }
  0x29   : > { %v719_v8 = vld [vmem:[%s1269_s17] sm:$0xff] }
  0x92   : > { %v555_v10 = vpop.permute.xlu1 %554  ;;  %v537_v11 = vpop.permute.xlu0 %536 }
  0x93   : > { %v543_v13 = vmul.f32 %v537_v11, %v524_v9 }
  0x95   : > { %v561_v14 = vadd.f32 %v555_v10, %v543_v13 }
  0x97   : > { %v567_v15 = vmax.f32 %v561_v14, 0.0 }
  0x99   : > { %v596_v17 = vsel %vm581_vm0, %v567_v15, 0.0  ;;  %v720_v15 = vld [vmem:[%s1269_s17 + $0x8] sm:$0xff] }
  0x9a   : > { %v532_v18 = vpop.permute.xlu0 %531  ;;  %v1034_v19 = vpack.i.bf16 0.0, %v596_v17  ;;  %v550_v21 = vpop.permute.xlu1 %549  ;;  %v1059_v38 = vpack.i.bf16 %v596_v17, %v1134_v37 }
  0x9b   : > { %v540_v20 = vmul.f32 %v532_v18, %v523_v16 }
  0x9c   : > { %1035 = vrot.lane.b32.xlu2 %v1034_v19, %s1131_s26 }
  0x9d   : > { %v558_v22 = vadd.f32 %v550_v21, %v540_v20 }
  0x9f   : > { %v564_v23 = vmax.f32 %v558_v22, 0.0 }
  0xa1   : > { %v593_v24 = vsel %vm581_vm0, %v564_v23, 0.0 }
  0xa2   : > { %v1044_v25 = vpack.i.bf16 %v593_v24, %v596_v17  ;;  %v1039_v26 = vpack.i.bf16 0.0, %v593_v24  ;;  %v1069_v40 = vpack.i.bf16 %v593_v24, %v1134_v37 }
  0xa4   : > { %1045 = vrot.lane.b32.xlu0 %v1044_v25, %s1132_s18  ;;  %1040 = vrot.lane.b32.xlu2 %v1039_v26, %s1131_s26  ;;  %s497_s26 = scalar_lea.vmem [#allocation5], %s1242_s16  ;;  %s943_s16 = sshll.u32 (%p1217_p6), %s1120_s27, 3 }
  0xa5   : > { %s844_s20 = scalar_lea.vmem (%p1217_p6), %s1311_s7, %s943_s16 }
  0xf6   : > { %v1036_v27 = vpop.permute.xlu2 %1035 }
  0xf7   : > { %v1038_v28 = vunpack.i.h.bf16 %v1036_v27  ;;  %v1037_v29 = vunpack.i.l.bf16 %v1036_v27 }
  0xf9   : > { %v616_v30 = vsel %vm614_vm1, %v1037_v29, %v1038_v28 }
  0xfa   : > { %v1054_v31 = vpack.i.bf16 %v616_v30, %v1037_v29 }
  0xfc   : > { %1055 = vrot.lane.b32.xlu1 %v1054_v31, %s1133_s19 }
  0xfe   : > { %v1041_v32 = vpop.permute.xlu2 %1040 }
  0xff   : > { %v1043_v33 = vunpack.i.h.bf16 %v1041_v32  ;;  %v1042_v34 = vunpack.i.l.bf16 %v1041_v32 }
 0x101   : > { %v615_v35 = vsel %vm614_vm1, %v1042_v34, %v1043_v33 }
 0x102   : > { %v1064_v36 = vpack.i.bf16 %v615_v35, %v1042_v34 }
 0x104   : > { %1060 = vrot.lane.b32.xlu1 %v1059_v38, %s1133_s19  ;;  %1065 = vrot.lane.b32.xlu2 %v1064_v36, %s1133_s19 }
 0x10c   : > { %628 = vperm.xlu1 %1033, %v620_v39   ;;  %1070 = vrot.lane.b32.xlu2 %v1069_v40, %s1133_s19 }
 0x116   : > { %v1046_v41 = vpop.permute.xlu0 %1045 }
 0x117   : > { %1050 = vrot.lane.b32.xlu0 %v1046_v41, %s1133_s19 }
 0x11f   : > { %623 = vperm.xlu0 %1032, %v619_v42  }
 0x15e   : > { %v1066_v43 = vpop.permute.xlu2 %1065 }
 0x15f   : > { %v1068_v45 = vunpack.i.h.bf16 %v1066_v43  ;;  %v1067_v46 = vunpack.i.l.bf16 %v1066_v43 }
 0x161   : > { %v656_v50 = vsel %vm653_vm2, %v1067_v46, %v1068_v45 }
 0x166   : > { %v1071_v53 = vpop.permute.xlu2 %1070 }
 0x167   : > { %v1073_v58 = vunpack.i.h.bf16 %v1071_v53  ;;  %v1072_v59 = vunpack.i.l.bf16 %v1071_v53 }
 0x169   : > { %v654_v63 = vsel %vm653_vm2, %v1072_v59, %v1073_v58 }
 0x16e   : > { %v1056_v44 = vpop.permute.xlu1 %1055 }
 0x16f   : > { %v1058_v47 = vunpack.i.h.bf16 %v1056_v44  ;;  %v1057_v48 = vunpack.i.l.bf16 %v1056_v44 }
 0x171   : > { %v657_v49 = vsel %vm653_vm2, %v1057_v48, %v1058_v47 }
 0x172   : > { %681 = vmatpush.msra.mxu0 %v657_v49  ;;  %949 = vmatpush.msra.mxu1 %v657_v49 }
 0x174   : > { %682 = vmatpush.msra.mxu0 %v656_v50  ;;  %950 = vmatpush.msra.mxu1 %v656_v50 }
 0x176   : > { %v1061_v51 = vpop.permute.xlu1 %1060 }
 0x177   : > { %v1063_v55 = vunpack.i.h.bf16 %v1061_v51  ;;  %v1062_v56 = vunpack.i.l.bf16 %v1061_v51 }
 0x179   : > { %v655_v60 = vsel %vm653_vm2, %v1062_v56, %v1063_v55 }
 0x17e   : > { %v629_v0 = vpop.permute.xlu1 %628 }
 0x189   : > { %v1051_v52 = vpop.permute.xlu0 %1050 }
 0x18a   : > { %v1052_v54 = vunpack.i.l.bf16 %v1051_v52  ;;  %v1053_v57 = vunpack.i.h.bf16 %v1051_v52 }
 0x18c   : > { %683 = vmatpush.msra.mxu0 %v1052_v54  ;;  %951 = vmatpush.msra.mxu1 %v1052_v54 }
 0x18e   : > { %684 = vmatpush.msra.mxu0 %v1053_v57  ;;  %952 = vmatpush.msra.mxu1 %v1053_v57 }
 0x190   : > { %685 = vmatpush.msra.mxu0 %v655_v60  ;;  %953 = vmatpush.msra.mxu1 %v655_v60 }
 0x191   : > { %v624_v1 = vpop.permute.xlu0 %623 }
 0x192   : > { %686 = vmatpush.msra.mxu0 %v654_v63  ;;  %954 = vmatpush.msra.mxu1 %v654_v63 }
 0x193   : > { %940 = vmatmul.msk.f32.vlgmr.msra.gmra.mxu0 %vm664_vm3, %v617_v61  ;;  %941 = vmatmul.msk.f32.vlgmr.msra.gmra.mxu1 %vm664_vm3, %v618_v62 }
 0x210   : > { %v688_v2 = vpop.f32.mrf.mxu0  ;;  %v691_v3 = vpop.f32.mrf.mxu1 }
 0x211   : > { %v689_v4 = vadd.f32 %v688_v2, %v624_v1  ;;  %v692_v5 = vadd.f32 %v691_v3, %v629_v0 }
 0x213   : > { %v700_v6 = vsel %vm696_vm4, %v692_v5, 0.0  ;;  %v699_v7 = vsel %vm696_vm4, %v689_v4, 0.0 }
 0x214   : > { %711 = vadd.xlane.f32.xlu0 %v700_v6  ;;  %702 = vst [vmem:[%s497_s26 + $0x8] sm:$0xff] %v700_v6  ;;  %709 = vadd.xlane.f32.xlu2 %v699_v7  ;;  %v713_v9 = vmul.f32 %v699_v7, %v699_v7  ;;  %v714_v10 = vmul.f32 %v700_v6, %v700_v6 }
 0x215   : > { %701 = vst [vmem:[%s497_s26] sm:$0xff] %v699_v7 }
 0x216   : > { %715 = vadd.xlane.f32.xlu1 %v713_v9 }
 0x21b   : > { %v776_v21 = vld [vmem:[%s497_s26 + $0x8] sm:$0xff] (%p1217_p6) }
 0x21c   : > { %717 = vadd.xlane.f32.xlu2 %v714_v10  ;;  %v774_v20 = vld [vmem:[%s497_s26] sm:$0xff] (%p1217_p6)  ;;  %945 = vst [vmem:[%s844_s20 + $0x28] sm:$0xff] (%p1217_p6), %v776_v21 }
 0x21d   : > { %944 = vst [vmem:[%s844_s20 + $0x8] sm:$0xff] (%p1217_p6), %v774_v20 }
 0x287   : > { %v710_v11 = vpop.xlane.xlu2 %709  ;;  %v712_v16 = vpop.xlane.xlu0 %711 }
 0x289   : > { %v716_v12 = vpop.xlane.xlu1 %715 }
 0x28a   : > { %v722_v13 = vsel %vm721_vm5, %v710_v11, %v716_v12 }
 0x28b   : > { %v724_v14 = vadd.f32 %v722_v13, %v719_v8 }
 0x28d   : > { %726 = vst.msk [vmem:[%s1269_s17] sm:$0xff] %vm653_vm2, %v724_v14 }
 0x28f   : > { %v718_v17 = vpop.xlane.xlu2 %717  ;;  %739 = sbr.rel (!%p1217_p6) target bundleno = 660 (0x294), region = 170 }
 0x290   : > { %v723_v18 = vsel %vm721_vm5, %v712_v16, %v718_v17 }
 0x291   : > { %v725_v19 = vadd.f32 %v723_v18, %v720_v15 }
 0x293   : > { %727 = vst.msk [vmem:[%s1269_s17 + $0x8] sm:$0xff] %vm653_vm2, %v725_v19 }
 0x294 PF: > { %s19_s29 = sadd.s32 1, %s1128_s29   ;;  %s1314_s26 = smov %s1116_s2 }
 0x295   : > { %p16_p12 = scmp.ge.s32.totalorder %s19_s29, 4   ;;  %s1315_s2 = smov %s1215_s14 }
 0x296   : > { %s1316_s27 = smov %s1124_s28  ;;  %s1317_s28 = smov %s1207_s10 }
 0x297   :  { %18 = sbr.rel (!%p16_p12) target bundleno = 3 (0x3), region = 267 }

</bundles_post_ra>
